<compile_context>
chip_gen: v7x
topology: tpu7x:2x2x1
jax: 0.10.0
libtpu: 0.0.40
codegen_flags: <defaults>
</compile_context>

<pallas_src>
import jax
import jax.numpy as jnp
from jax.experimental import pallas as pl
from jax.experimental.pallas import tpu as pltpu

LANE = 128
SUBLANE = 8


def _round_up(x, m):
    return (x + m - 1) // m * m


def mlp_kernel(x_ref, w1_ref, b1_ref, w2_ref, b2_ref, o_ref):
    # x arrives as f32 and is cast to bf16 in-kernel (avoids an extra wrapper pass).
    xb = x_ref[...].astype(jnp.bfloat16)
    # fc1: (TB, In)bf16 @ (In, Hp)bf16 -> f32 MXU accumulate.
    h = jnp.dot(xb, w1_ref[...], preferred_element_type=jnp.float32)
    h = jnp.maximum(h + b1_ref[...], 0.0)          # bias + ReLU in f32
    # Dropout(p=0.2): identity at inference.
    # TODO(synk): training-mode dropout (random mask + 1/(1-p) scaling) not implemented.
    # fc2: (TB, Hp)bf16 @ (Hp, Op)bf16 -> f32 MXU accumulate, bias in f32.
    out = jnp.dot(h.astype(jnp.bfloat16), w2_ref[...],
                  preferred_element_type=jnp.float32)
    out = out + b2_ref[...]
    # bf16 lane-dense store (unmasked vst); halves output HBM writeback.
    o_ref[...] = out.astype(o_ref.dtype)


def make_forward(w1, b1, w2, b2, *, batch_tile=1024):
    """Build a jitted forward.  Pads weights/biases and casts matmul operands to bf16
    ONCE here (hoisted out of the per-call path); the returned forward only touches x.

    w1: (in, hidden), b1: (hidden,) or (1, hidden), w2: (hidden, out), b2: (out,) or (1, out).
    """
    in_size, hidden = w1.shape
    out_size = w2.shape[1]
    in_p = _round_up(in_size, LANE)
    hid_p = _round_up(hidden, LANE)
    out_p = _round_up(out_size, LANE)

    # One-time parameter padding (zeros keep the math exact) + bf16 cast for the MXU.
    w1p = (jnp.zeros((in_p, hid_p), jnp.float32)
           .at[:in_size, :hidden].set(w1).astype(jnp.bfloat16))
    b1p = jnp.zeros((1, hid_p), jnp.float32).at[:, :hidden].set(b1.reshape(1, -1))
    w2p = (jnp.zeros((hid_p, out_p), jnp.float32)
           .at[:hidden, :out_size].set(w2).astype(jnp.bfloat16))
    b2p = jnp.zeros((1, out_p), jnp.float32).at[:, :out_size].set(b2.reshape(1, -1))

    @jax.jit
    def forward(x):
        batch = x.shape[0]
        x2 = x.reshape(batch, -1).astype(jnp.float32)   # mirrors x.view(x.size(0), -1)
        assert x2.shape[1] == in_size, "flattened input does not match fc1.in_features"

        # --- choose batch tiling ---------------------------------------------------
        if batch < 2 * SUBLANE:
            tb = _round_up(batch, SUBLANE)
            n_tiles = 1
        else:
            # >=2 tiles so v7x can shard the batch axis across its two TensorCores;
            # balanced tile size avoids near-2x padding waste for awkward batches.
            nt = max(pl.cdiv(batch, batch_tile), 2)
            tb = _round_up(pl.cdiv(batch, nt), SUBLANE)
            n_tiles = pl.cdiv(batch, tb)
        b_p = tb * n_tiles

        pad_rows = b_p - batch
        pad_cols = in_p - in_size
        if pad_rows or pad_cols:
            # Single cheap pad; skipped entirely when batch/in_size are already aligned.
            x2 = jnp.pad(x2, ((0, pad_rows), (0, pad_cols)))

        cost = pl.CostEstimate(
            flops=2 * b_p * (in_p * hid_p + hid_p * out_p),
            transcendentals=0,
            bytes_accessed=(b_p * in_p * 4            # x read (f32)
                            + in_p * hid_p * 2 + hid_p * out_p * 2   # weights (bf16)
                            + hid_p * 4 + out_p * 4                  # biases (f32)
                            + b_p * out_p * 2),                      # logits out (bf16)
        )
        out_shape = jax.ShapeDtypeStruct((b_p, out_p), jnp.bfloat16)

        if n_tiles == 1:
            # Tiny batch: single un-pipelined invocation, everything pinned to VMEM.
            out = pl.pallas_call(
                mlp_kernel,
                out_shape=out_shape,
                in_specs=[pl.BlockSpec(memory_space=pltpu.MemorySpace.VMEM)] * 5,
                out_specs=pl.BlockSpec(memory_space=pltpu.MemorySpace.VMEM),
                cost_estimate=cost,
            )(x2, w1p, b1p, w2p, b2p)
        else:
            # Batch-tiled grid; weights/biases use constant index_maps so Pallas keeps
            # them VMEM-resident (no re-DMA per step).
            out = pl.pallas_call(
                mlp_kernel,
                out_shape=out_shape,
                grid_spec=pltpu.PrefetchScalarGridSpec(
                    num_scalar_prefetch=0,
                    grid=(n_tiles,),
                    in_specs=[
                        pl.BlockSpec((tb, in_p), lambda i: (i, 0)),
                        pl.BlockSpec((in_p, hid_p), lambda i: (0, 0)),
                        pl.BlockSpec((1, hid_p), lambda i: (0, 0)),
                        pl.BlockSpec((hid_p, out_p), lambda i: (0, 0)),
                        pl.BlockSpec((1, out_p), lambda i: (0, 0)),
                    ],
                    out_specs=pl.BlockSpec((tb, out_p), lambda i: (i, 0)),
                ),
                compiler_params=pltpu.CompilerParams(
                    # "parallel" lets v7x shard the batch tiles across its 2 TCs;
                    # no-op on v5e/v6e (single TC).
                    dimension_semantics=("parallel",),
                ),
                cost_estimate=cost,
            )(x2, w1p, b1p, w2p, b2p)

        # Padded rows / lanes are garbage by construction; slice before use.
        return out[:batch, :out_size].astype(jnp.float32)

    return forward


def _reference(x, w1, b1, w2, b2):
    """Pure-JAX reference with the same bf16 operand rounding as the kernel."""
    xb = x.astype(jnp.bfloat16).astype(jnp.float32)
    w1b = w1.astype(jnp.bfloat16).astype(jnp.float32)
    w2b = w2.astype(jnp.bfloat16).astype(jnp.float32)
    h = jnp.maximum(xb @ w1b + b1.reshape(1, -1), 0.0)
    h = h.astype(jnp.bfloat16).astype(jnp.float32)
    return h @ w2b + b2.reshape(1, -1)


if __name__ == "__main__":
    # Small, forward-consistent sizes:
    #   input_size=256 (TF-IDF vocab stand-in), hidden_size=64, output_size=16
    input_size, hidden_size, output_size = 256, 64, 16

    key = jax.random.PRNGKey(0)
    kx1, kw1, kb1, kw2, kb2, kx2, kx3 = jax.random.split(key, 7)

    # nn.Linear-style init, stored transposed relative to PyTorch: (in, out).
    lim1 = 1.0 / jnp.sqrt(input_size)
    w1 = jax.random.uniform(kw1, (input_size, hidden_size), jnp.float32, -lim1, lim1)
    b1 = jax.random.uniform(kb1, (1, hidden_size), jnp.float32, -lim1, lim1)
    lim2 = 1.0 / jnp.sqrt(hidden_size)
    w2 = jax.random.uniform(kw2, (hidden_size, output_size), jnp.float32, -lim2, lim2)
    b2 = jax.random.uniform(kb2, (1, output_size), jnp.float32, -lim2, lim2)

    # One-time parameter preparation (padding + bf16 cast hoisted out of the forward).
    forward = make_forward(w1, b1, w2, b2, batch_tile=1024)

    # Path 1: tiny batch -> single un-gridded invocation (explicit VMEM placement).
    x_small = jax.random.uniform(kx1, (8, input_size), dtype=jnp.float32)
    logits_small = jax.block_until_ready(forward(x_small))
    assert logits_small.shape == (8, output_size)
    assert jnp.allclose(logits_small, _reference(x_small, w1, b1, w2, b2),
                        atol=2e-2, rtol=2e-2)

    # Path 2: batch=512 -> 2 balanced tiles of 256 rows (megacore-shardable on v7x).
    x_big = jax.random.uniform(kx2, (512, input_size), dtype=jnp.float32)
    logits_big = jax.block_until_ready(forward(x_big))
    assert logits_big.shape == (512, output_size)
    assert jnp.allclose(logits_big, _reference(x_big, w1, b1, w2, b2),
                        atol=2e-2, rtol=2e-2)

    # Path 3: awkward batch=300 -> balanced tb=152, only 4 padded rows (not ~200).
    x_odd = jax.random.uniform(kx3, (300, input_size), dtype=jnp.float32)
    logits_odd = jax.block_until_ready(forward(x_odd))
    assert logits_odd.shape == (300, output_size)
    assert jnp.allclose(logits_odd, _reference(x_odd, w1, b1, w2, b2),
                        atol=2e-2, rtol=2e-2)

    print("KERNEL_OK")
</pallas_src>

<mosaic_0001>
module attributes {stable_mosaic.version = 11 : i64} {
  func.func @mlp_kernel(%arg0: memref<8x256xf32, #tpu.memory_space<vmem>>, %arg1: memref<256x128xbf16, #tpu.memory_space<vmem>>, %arg2: memref<1x128xf32, #tpu.memory_space<vmem>>, %arg3: memref<128x128xbf16, #tpu.memory_space<vmem>>, %arg4: memref<1x128xf32, #tpu.memory_space<vmem>>, %arg5: memref<8x128xbf16, #tpu.memory_space<vmem>>) attributes {dimension_semantics = [], scalar_prefetch = 0 : i64, scratch_operands = 0 : i64, tpu.core_type = #tpu.core_type<tc>} {
    %c0 = arith.constant 0 : index
    %c0_0 = arith.constant 0 : index
    %0 = vector.load %arg0[%c0, %c0_0] : memref<8x256xf32, #tpu.memory_space<vmem>>, vector<8x256xf32>
    %1 = arith.truncf %0 : vector<8x256xf32> to vector<8x256xbf16>
    %c0_1 = arith.constant 0 : index
    %c0_2 = arith.constant 0 : index
    %2 = vector.load %arg1[%c0_1, %c0_2] : memref<256x128xbf16, #tpu.memory_space<vmem>>, vector<256x128xbf16>
    %cst = arith.constant dense<0.000000e+00> : vector<8x128xf32>
    %3 = tpu.matmul %1, %2, %cst {dimension_numbers = #tpu.dot_dimension_numbers<[1], [0], [0], [1], [0, 0, 1, 1], [], []>} : vector<8x256xbf16>, vector<256x128xbf16>, vector<8x128xf32> -> vector<8x128xf32>
    %c0_3 = arith.constant 0 : index
    %c0_4 = arith.constant 0 : index
    %4 = vector.load %arg2[%c0_3, %c0_4] : memref<1x128xf32, #tpu.memory_space<vmem>>, vector<1x128xf32>
    %5 = vector.broadcast %4 : vector<1x128xf32> to vector<8x128xf32>
    %6 = arith.addf %3, %5 : vector<8x128xf32>
    %cst_5 = arith.constant 0.000000e+00 : f32
    %7 = vector.broadcast %cst_5 : f32 to vector<8x128xf32>
    %8 = arith.maximumf %6, %7 : vector<8x128xf32>
    %9 = arith.truncf %8 : vector<8x128xf32> to vector<8x128xbf16>
    %c0_6 = arith.constant 0 : index
    %c0_7 = arith.constant 0 : index
    %10 = vector.load %arg3[%c0_6, %c0_7] : memref<128x128xbf16, #tpu.memory_space<vmem>>, vector<128x128xbf16>
    %cst_8 = arith.constant dense<0.000000e+00> : vector<8x128xf32>
    %11 = tpu.matmul %9, %10, %cst_8 {dimension_numbers = #tpu.dot_dimension_numbers<[1], [0], [0], [1], [0, 0, 1, 1], [], []>} : vector<8x128xbf16>, vector<128x128xbf16>, vector<8x128xf32> -> vector<8x128xf32>
    %c0_9 = arith.constant 0 : index
    %c0_10 = arith.constant 0 : index
    %12 = vector.load %arg4[%c0_9, %c0_10] : memref<1x128xf32, #tpu.memory_space<vmem>>, vector<1x128xf32>
    %13 = vector.broadcast %12 : vector<1x128xf32> to vector<8x128xf32>
    %14 = arith.addf %11, %13 : vector<8x128xf32>
    %15 = arith.truncf %14 : vector<8x128xf32> to vector<8x128xbf16>
    %c0_11 = arith.constant 0 : index
    %c0_12 = arith.constant 0 : index
    %16 = vector.load %arg5[%c0_11, %c0_12] : memref<8x128xbf16, #tpu.memory_space<vmem>>, vector<8x128xbf16>
    tpu.vector_store %arg5[%c0_11, %c0_12], %15 {strides = array<i32>} : memref<8x128xbf16, #tpu.memory_space<vmem>>, vector<8x128xbf16>,
    return
  }
}

</mosaic_0001>

<bundles_post_ra>
// kernel: forward.1
= control target key start
LH: loop header
LB: loop body
LE: loop exit
PB: predicated region body
PF: predicated region fallthrough
CT: control target
= control target key end

     0   :  { %10 = vsyncpa [#allocation3], 0  ;;  %s635_s0 = inlined_call_operand.hbm [shape: f32[8,256], index: 0, kind: input, shape index: {}]   ;;  %s636_s1 = inlined_call_operand.hbm [shape: bf16[256,128], index: 1, kind: input, shape index: {}]   ;;  %s637_s2 = inlined_call_operand.vmem [shape: f32[1,128], index: 2, kind: input, shape index: {}]   ;;  %s638_s3 = inlined_call_operand.hbm [shape: bf16[128,128], index: 3, kind: input, shape index: {}]   ;;  %s639_s4 = inlined_call_operand.vmem [shape: f32[1,128], index: 4, kind: input, shape index: {}]   ;;  %s640_s5 = inlined_call_operand.vmem [shape: bf16[8,128], index: 5, kind: output, shape index: {}]  }
   0x1   :  { %11 = vsyncpa [#allocation5], 0  ;;  %s538_s18 = smov [#allocation4]   ;;  %s468_s22 = scalar_lea.hbm %s636_s1, 2048 }
   0x2   :  { %s27_s19 = sshll.u32 %s538_s18, 4  ;;  %p469_p0 = scmp.ne.s32.totalorder %s636_s1, %s468_s22  ;;  %s28_s19 = int_to_ptr.vmem [resolvable:$true] %s27_s19 }
   0x3   :  { %p472_p1 = scmp.lt.u32.totalorder %s468_s22, %s636_s1 }
   0x5   :  { %p474_p2 = pnand %p472_p1, %p469_p0 }
   0x7   :  { %477 = shalt.err (!%p474_p2)
}
   0x8   :  { %s478_s27 = scalar_lea.vmem %s28_s19, 2048  ;;  %p483_p4 = scmp.lt.s32.totalorder %s28_s19, %s28_s19 }
   0x9   :  { %p479_p3 = scmp.ne.s32.totalorder %s28_s19, %s478_s27  ;;  %p484_p5 = scmp.lt.s32.totalorder %s478_s27, %s478_s27 }
   0xb   :  { %p485_p6 = por %p484_p5, %p483_p4 }
   0xd   :  { %p486_p7 = pnand %p485_p6, %p479_p3 }
   0xf   :  { %489 = shalt.err (!%p486_p7)
}
  0x10   :  { %s539_s28 = smov 64   ;;  %s540_s29 = smov 4  }
  0x11   :  { %33 = dma.hbm_to_vmem [thread:$0]  %s636_s1, 2048, %s28_s19, [#allocation5], %s539_s28, %s539_s28, %s540_s29  }
  0x12   :  { %s541_s7 = smov [#allocation2]   ;;  %s542_s9 = smov [#allocation6]  }
  0x13   :  { %s18_s8 = sshll.u32 %s541_s7, 4  ;;  %s41_s10 = sshll.u32 %s542_s9, 4  ;;  %s19_s8 = int_to_ptr.vmem [resolvable:$true] %s18_s8  ;;  %s42_s10 = int_to_ptr.vmem [resolvable:$true] %s41_s10 }
  0x14   :  { %s490_s13 = scalar_lea.hbm %s635_s0, 256 }
  0x15   :  { %p491_p8 = scmp.ne.s32.totalorder %s635_s0, %s490_s13  ;;  %p494_p9 = scmp.lt.u32.totalorder %s490_s13, %s635_s0 }
  0x17   :  { %p496_p10 = pnand %p494_p9, %p491_p8 }
  0x19   :  { %499 = shalt.err (!%p496_p10)
}
  0x1a   :  { %s500_s1 = scalar_lea.vmem %s19_s8, 256  ;;  %p505_p12 = scmp.lt.s32.totalorder %s19_s8, %s19_s8 }
  0x1b   :  { %p501_p11 = scmp.ne.s32.totalorder %s19_s8, %s500_s1  ;;  %p506_p13 = scmp.lt.s32.totalorder %s500_s1, %s500_s1 }
  0x1d   :  { %p507_p0 = por %p506_p13, %p505_p12 }
  0x1f   :  { %p508_p1 = pnand %p507_p0, %p501_p11 }
  0x21   :  { %511 = shalt.err (!%p508_p1)
}
  0x22   :  { %21 = dma.hbm_to_vmem [thread:$0]  %s635_s0, 256, %s19_s8, [#allocation3]  }
  0x23   :  { %s512_s22 = scalar_lea.hbm %s638_s3, 1024 }
  0x24   :  { %p513_p2 = scmp.ne.s32.totalorder %s638_s3, %s512_s22  ;;  %p516_p3 = scmp.lt.u32.totalorder %s512_s22, %s638_s3 }
  0x26   :  { %p518_p4 = pnand %p516_p3, %p513_p2 }
  0x28   :  { %521 = shalt.err (!%p518_p4)
}
  0x29   :  { %s522_s27 = scalar_lea.vmem %s42_s10, 1024  ;;  %p527_p6 = scmp.lt.s32.totalorder %s42_s10, %s42_s10 }
  0x2a   :  { %p523_p5 = scmp.ne.s32.totalorder %s42_s10, %s522_s27  ;;  %p528_p7 = scmp.lt.s32.totalorder %s522_s27, %s522_s27 }
  0x2c   :  { %p529_p8 = por %p528_p7, %p527_p6 }
  0x2e   :  { %p530_p9 = pnand %p529_p8, %p523_p5 }
  0x30   :  { %533 = shalt.err (!%p530_p9)
}
  0x31   :  { %47 = dma.hbm_to_vmem [thread:$0]  %s638_s3, 1024, %s42_s10, [#allocation5], %s539_s28, %s539_s28, %s540_s29  }
  0x32   :  { %534 = dma.done.wait [#allocation3], 256  }
  0x33   :  { %535 = vsyncadd [#allocation3], 4294967040 }
  0x34   :  { %536 = dma.done.wait [#allocation5], 3072  }
  0x35   :  { %537 = vsyncadd [#allocation5], 4294964224  ;;  %v543_v0 = vmov 0.0   ;;  %v444_v1 = vld [vmem:[#allocation4 + $0x40] sm:$0xff]   ;;  %v446_v3 = vld [vmem:[#allocation4 + $0x48] sm:$0xff]   ;;  %vm544_vm0 = vmmov 0  }
  0x36   :  { %417 = vmatprep.subr.bf16.mxu1 %v543_v0  ;;  %v445_v2 = vld [vmem:[#allocation4] sm:$0xff]   ;;  %386 = vmatprep.subr.bf16.mxu0 %v444_v1  ;;  %v447_v4 = vld [vmem:[#allocation4 + $0x8] sm:$0xff]   ;;  %v448_v5 = vld [vmem:[#allocation4 + $0x50] sm:$0xff]  }
  0x37   :  { %387 = vmatpush3.bf16.msra.mxu0 %v445_v2  ;;  %v449_v6 = vld [vmem:[#allocation4 + $0x10] sm:$0xff]   ;;  %v450_v7 = vld [vmem:[#allocation4 + $0x58] sm:$0xff]   ;;  %v452_v9 = vld [vmem:[#allocation4 + $0x60] sm:$0xff]   ;;  %433 = vmatprep.mubr.msk.bf16.mxu1 %vm544_vm0, %v543_v0 }
  0x38   :  { %388 = vmatprep.subr.bf16.mxu0 %v446_v3  ;;  %v451_v8 = vld [vmem:[#allocation4 + $0x18] sm:$0xff]   ;;  %v453_v10 = vld [vmem:[#allocation4 + $0x20] sm:$0xff]   ;;  %v454_v11 = vld [vmem:[#allocation4 + $0x68] sm:$0xff]  }
  0x39   :  { %v61_v12 = vld [vmem:[#allocation2 + $0x8] sm:$0xff]  ;;  %v460_v14 = vld [vmem:[#allocation6] sm:$0xff]   ;;  %v455_v15 = vld [vmem:[#allocation4 + $0x28] sm:$0xff]  }
  0x3a   :  { %v63_v13 = vpack.c.bf16 %v61_v12, %v61_v12  ;;  %v456_v16 = vld [vmem:[#allocation4 + $0x70] sm:$0xff]   ;;  %418 = vmatpush3.bf16.msra.mxu1 %v460_v14  ;;  %v461_v17 = vld [vmem:[#allocation6 + $0x8] sm:$0xff]   ;;  %v458_v19 = vld [vmem:[#allocation4 + $0x78] sm:$0xff]  }
  0x3b   :  { %389 = vmatpush3.bf16.msra.mxu0 %v447_v4  ;;  %419 = vmatprep.subr.bf16.mxu1 %v543_v0  ;;  %v457_v18 = vld [vmem:[#allocation4 + $0x30] sm:$0xff]   ;;  %v459_v21 = vld [vmem:[#allocation4 + $0x38] sm:$0xff]   ;;  %v464_v25 = vld [vmem:[#allocation6 + $0x20] sm:$0xff]  }
  0x3c   :  { %390 = vmatprep.subr.bf16.mxu0 %v448_v5  ;;  %231 = vmatprep.mubr.bf16.mxu0 %v63_v13  ;;  %v462_v20 = vld [vmem:[#allocation6 + $0x10] sm:$0xff]   ;;  %v463_v23 = vld [vmem:[#allocation6 + $0x18] sm:$0xff]   ;;  %v465_v26 = vld [vmem:[#allocation6 + $0x28] sm:$0xff]  }
  0x3d   :  { %v60_v22 = vld [vmem:[#allocation2] sm:$0xff]  ;;  %v467_v28 = vld [vmem:[#allocation6 + $0x38] sm:$0xff]  }
  0x3e   :  { %420 = vmatpush3.bf16.msra.mxu1 %v461_v17  ;;  %v62_v24 = vpack.c.bf16 %v60_v22, %v60_v22  ;;  %v466_v27 = vld [vmem:[#allocation6 + $0x30] sm:$0xff]  }
  0x3f   :  { %391 = vmatpush3.bf16.msra.mxu0 %v449_v6  ;;  %421 = vmatprep.subr.bf16.mxu1 %v543_v0  ;;  %v360_v30 = vld [vmem:[%s637_s2] ss:$0 sm:$0xff] }
  0x40   :  { %392 = vmatprep.subr.bf16.mxu0 %v450_v7  ;;  %v377_v38 = vld [vmem:[%s639_s4] ss:$0 sm:$0xff] }
  0x42   :  { %422 = vmatpush3.bf16.msra.mxu1 %v462_v20 }
  0x43   :  { %393 = vmatpush3.bf16.msra.mxu0 %v451_v8  ;;  %423 = vmatprep.subr.bf16.mxu1 %v543_v0 }
  0x44   :  { %394 = vmatprep.subr.bf16.mxu0 %v452_v9 }
  0x46   :  { %424 = vmatpush3.bf16.msra.mxu1 %v463_v23 }
  0x47   :  { %395 = vmatpush3.bf16.msra.mxu0 %v453_v10  ;;  %425 = vmatprep.subr.bf16.mxu1 %v543_v0 }
  0x48   :  { %396 = vmatprep.subr.bf16.mxu0 %v454_v11 }
  0x4a   :  { %426 = vmatpush3.bf16.msra.mxu1 %v464_v25 }
  0x4b   :  { %397 = vmatpush3.bf16.msra.mxu0 %v455_v15  ;;  %427 = vmatprep.subr.bf16.mxu1 %v543_v0 }
  0x4c   :  { %398 = vmatprep.subr.bf16.mxu0 %v456_v16 }
  0x4e   :  { %428 = vmatpush3.bf16.msra.mxu1 %v465_v26 }
  0x4f   :  { %399 = vmatpush3.bf16.msra.mxu0 %v457_v18  ;;  %429 = vmatprep.subr.bf16.mxu1 %v543_v0 }
  0x50   :  { %400 = vmatprep.subr.bf16.mxu0 %v458_v19 }
  0x52   :  { %430 = vmatpush3.bf16.msra.mxu1 %v466_v27 }
  0x53   :  { %401 = vmatpush3.bf16.msra.mxu0 %v459_v21  ;;  %431 = vmatprep.subr.bf16.mxu1 %v543_v0 }
  0x56   :  { %232 = vmatmul.mubr.bf16.vlgmr.msra.gmra.mrb[0].mxu0 %v62_v24  ;;  %432 = vmatpush3.bf16.msra.mxu1 %v467_v28 }
 0x129   :  { %v402_v29 = vpop.f32.mrb[0].mxu0 }
 0x12a   :  { %v403_v31 = vpop.f32.mrb[1].mxu0 }
 0x12b   :  { %v404_v32 = vadd.f32 %v403_v31, %v402_v29  ;;  %v405_v33 = vpop.f32.mrb[2].mxu0 }
 0x12c   :  { %v406_v34 = vpop.f32.mrb[3].mxu0 }
 0x12d   :  { %v234_v35 = vadd.f32 %v404_v32, %v360_v30 }
 0x12f   :  { %v239_v36 = vmax.f32 %v234_v35, 0.0 }
 0x131   :  { %v240_v37 = vpack.c.bf16 %v239_v36, %v239_v36 }
 0x133   :  { %434 = vmatmul.mubr.bf16.vlgmr.msra.gmra.mrb[0].mxu1 %v240_v37 }
 0x206   :  { %v346_v39 = vpop.f32.mrb[0].mxu1 }
 0x207   :  { %v347_v40 = vadd.f32 %v377_v38, %v346_v39  ;;  %v435_v41 = vpop.f32.mrb[1].mxu1 }
 0x208   :  { %v349_v42 = vpop.f32.mrb[2].mxu1 }
 0x209   :  { %v352_v43 = vpack.c.bf16 %v347_v40, %v347_v40  ;;  %v436_v44 = vpop.f32.mrb[3].mxu1 }
 0x20b   :  { %353 = vst [vmem:[%s640_s5] sm:$0xf] %v352_v43 }
 0x20c   :  { %358 = vsyncpa [#allocation3], 1 }
 0x20d   :  { %359 = vsyncpa [#allocation5], 1 }

</bundles_post_ra>
